<compile_context>
chip_gen: v7x
topology: tpu7x:2x2x1
jax: 0.10.0
libtpu: 0.0.40
codegen_flags: <defaults>
</compile_context>

<pallas_src>
import math
from functools import partial

import jax
import jax.numpy as jnp
from jax.experimental import pallas as pl
from jax.experimental.pallas import tpu as pltpu

NEG_SLOPE = 0.01  # PyTorch F.leaky_relu default
_LANE = 128


def _leaky_relu(z):
    # max(z, 0.01*z): 2 VPU ops instead of cmp+mul+select.
    return jnp.maximum(z, NEG_SLOPE * z)


def _round_up(n, m):
    return ((n + m - 1) // m) * m


# --------------------------------- kernels ----------------------------------

def _mlp_store(xf, w1_ref, b1_ref, w2_ref, b2_ref, w3_ref, b3_ref,
               h1_ref, h2_ref, h3_ref, compute_dtype):
    """Shared 3-layer MLP body on a feature-major tile xf = (c_in, T)."""
    c = compute_dtype
    # h1 = W1 @ x + b1   (no activation) -> middle representation h1
    h1 = jnp.dot(w1_ref[...].astype(c), xf.astype(c),
                 preferred_element_type=jnp.float32) + b1_ref[...]
    h1_ref[...] = h1.astype(h1_ref.dtype)
    # h2 = leaky_relu(W2 @ h1 + b2)
    z2 = jnp.dot(w2_ref[...].astype(c), h1.astype(c),
                 preferred_element_type=jnp.float32) + b2_ref[...]
    h2 = _leaky_relu(z2)
    h2_ref[...] = h2.astype(h2_ref.dtype)
    # h3 = leaky_relu(W3 @ h2 + b3)
    z3 = jnp.dot(w3_ref[...].astype(c), h2.astype(c),
                 preferred_element_type=jnp.float32) + b3_ref[...]
    h3 = _leaky_relu(z3)
    h3_ref[...] = h3.astype(h3_ref.dtype)


def teacher_gather_kernel(x_ref, idx_ref, imp_ref,
                          w1_ref, b1_ref, w2_ref, b2_ref, w3_ref, b3_ref,
                          h1_ref, h2_ref, h3_ref, *, compute_dtype):
    """Primary kernel: imputation rows gathered in-kernel via one-hot MXU matmul.

    Feature-major tiles: x is (c_in, T), outputs are (feat, T) with the
    row/lane axis T a multiple of 128 -> unmasked, lane-dense stores.
    imp_ref is the whole (c_in, nbr_nodes) table, resident in VMEM.
    """
    x = x_ref[...]
    nbr = imp_ref.shape[1]
    tile = x.shape[1]
    # one-hot(idx): (nbr, T).  Padded tail columns have idx=0 -> row 0, but the
    # padded x columns are 0 (not NaN) so imputation never triggers there.
    node_ids = jax.lax.broadcasted_iota(jnp.int32, (nbr, tile), 0)
    onehot = (node_ids == idx_ref[...]).astype(x.dtype)
    imp_cols = jnp.dot(imp_ref[...], onehot, preferred_element_type=jnp.float32)
    xf = jnp.where(jnp.isnan(x), imp_cols.astype(x.dtype), x)   # NaN imputation (VPU)
    _mlp_store(xf, w1_ref, b1_ref, w2_ref, b2_ref, w3_ref, b3_ref,
               h1_ref, h2_ref, h3_ref, compute_dtype)


def teacher_pregathered_kernel(xi_ref,
                               w1_ref, b1_ref, w2_ref, b2_ref, w3_ref, b3_ref,
                               h1_ref, h2_ref, h3_ref, *, compute_dtype):
    """Fallback kernel (large nbr_nodes): x and pre-gathered imputation rows
    arrive stacked as one (2, c_in, T) stream -> a single input DMA stream."""
    x = xi_ref[0]
    imp = xi_ref[1]
    xf = jnp.where(jnp.isnan(x), imp, x)
    _mlp_store(xf, w1_ref, b1_ref, w2_ref, b2_ref, w3_ref, b3_ref,
               h1_ref, h2_ref, h3_ref, compute_dtype)


# ------------------------------ tile selection -------------------------------

def _vmem_capacity_bytes():
    try:
        return int(pltpu.get_tpu_info().vmem_capacity_bytes)
    except Exception:
        return 64 << 20   # conservative: v7x physical VMEM per TensorCore


def _choose_tile_and_vmem(n_rows, per_row_bytes, resident_bytes, target_tile):
    """Pick a lane-aligned row tile from a generation-aware VMEM budget."""
    n_min = _round_up(max(n_rows, 1), _LANE)
    vmem_cap = _vmem_capacity_bytes()
    vmem_limit = min(int(vmem_cap * 0.75), 96 << 20)   # headroom for compiler scratch
    # Conservative: assume resident blocks may still be double-buffered.
    budget = vmem_limit - 2 * resident_bytes - (4 << 20)
    cap_vmem = max(_LANE, (max(budget, 0) // max(per_row_bytes, 1)) // _LANE * _LANE)
    # Keep >= 2 (ideally ~8) grid steps when there is enough work so v7x's two
    # TensorCores both get a share; v5e/v6e (1 TC) are unaffected.
    if n_min >= 2 * _LANE:
        cap_steps = max(_LANE, _round_up((n_min + 7) // 8, _LANE))
    else:
        cap_steps = n_min
    tile = max(_LANE, min(target_tile, n_min, cap_steps, cap_vmem))
    tile = _round_up(tile, _LANE)
    n_pad = _round_up(n_min, tile)
    return tile, n_pad, vmem_limit


# --------------------------------- wrapper -----------------------------------

def teacher_features_forward(x, idx, imp_features, params, *,
                             tile_rows=4096,
                             compute_dtype=jnp.float32,
                             out_dtype=jnp.float32,
                             feature_major_out=False,
                             gather_in_kernel=None):
    """Runs the Teacher_Features forward pass. Returns (h3, [h1, h2, h3])."""
    w1, b1, w2, b2, w3, b3 = params
    n_rows, c_in = x.shape
    hid = w1.shape[1]
    c_out = w3.shape[1]
    nbr_nodes = imp_features.shape[0]

    if gather_in_kernel is None:
        # One-hot MXU gather only pays off while the (nbr_nodes, tile) one-hot
        # and the resident (c_in, nbr_nodes) table stay small.
        gather_in_kernel = nbr_nodes <= 1024

    f32 = 4
    out_bytes_per_row = (2 * hid + c_out) * f32
    if gather_in_kernel:
        per_row = 2 * (c_in * f32 + 4 + out_bytes_per_row) + nbr_nodes * f32
        resident = (hid * c_in + hid * hid + c_out * hid + 2 * hid + c_out
                    + c_in * nbr_nodes) * f32
    else:
        per_row = 2 * (2 * c_in * f32 + out_bytes_per_row)
        resident = (hid * c_in + hid * hid + c_out * hid + 2 * hid + c_out) * f32

    tile, n_pad, vmem_limit = _choose_tile_and_vmem(
        n_rows, per_row, resident, tile_rows)
    pad = n_pad - n_rows
    grid = (n_pad // tile,)

    # Feature-major, single pad-of-transpose (padded columns are 0, not NaN,
    # so they never trigger imputation; they are sliced off afterwards).
    x_t = jnp.pad(x.T.astype(jnp.float32), ((0, 0), (0, pad)))

    # Weights as (out, in); biases as column vectors (out, 1).
    w1_t, w2_t, w3_t = w1.T, w2.T, w3.T
    b1_c, b2_c, b3_c = b1.reshape(-1, 1), b2.reshape(-1, 1), b3.reshape(-1, 1)

    def col_spec(rows):
        return pl.BlockSpec((rows, tile), lambda i: (0, i))

    out_shapes = (
        jax.ShapeDtypeStruct((hid, n_pad), out_dtype),
        jax.ShapeDtypeStruct((hid, n_pad), out_dtype),
        jax.ShapeDtypeStruct((c_out, n_pad), out_dtype),
    )
    out_specs = [col_spec(hid), col_spec(hid), col_spec(c_out)]

    if gather_in_kernel:
        idx_pad = jnp.pad(idx.astype(jnp.int32), (0, pad))[None, :]     # (1, n_pad)
        imp_t = imp_features.T.astype(jnp.float32)                      # (c_in, nbr)
        kernel = partial(teacher_gather_kernel, compute_dtype=compute_dtype)
        operands = (x_t, idx_pad, imp_t, w1_t, b1_c, w2_t, b2_c, w3_t, b3_c)

        def make_in_specs(resident_spec):
            return [
                col_spec(c_in),                            # x tile (feature-major)
                pl.BlockSpec((1, tile), lambda i: (0, i)),  # idx tile (int32)
                resident_spec((c_in, nbr_nodes)),          # imputation table
                resident_spec((hid, c_in)), resident_spec((hid, 1)),     # W1^T, b1
                resident_spec((hid, hid)), resident_spec((hid, 1)),      # W2^T, b2
                resident_spec((c_out, hid)), resident_spec((c_out, 1)),  # W3^T, b3
            ]
    else:
        imp_g = jnp.pad(imp_features[idx].T.astype(jnp.float32), ((0, 0), (0, pad)))
        xi = jnp.stack([x_t, imp_g], axis=0)               # (2, c_in, n_pad)
        kernel = partial(teacher_pregathered_kernel, compute_dtype=compute_dtype)
        operands = (xi, w1_t, b1_c, w2_t, b2_c, w3_t, b3_c)

        def make_in_specs(resident_spec):
            return [
                pl.BlockSpec((2, c_in, tile), lambda i: (0, 0, i)),      # x + imp
                resident_spec((hid, c_in)), resident_spec((hid, 1)),
                resident_spec((hid, hid)), resident_spec((hid, 1)),
                resident_spec((c_out, hid)), resident_spec((c_out, 1)),
            ]

    def run(single_buffer_resident):
        if single_buffer_resident:
            def resident_spec(shape):
                # Constant index_map -> the block never changes; single-buffer
                # it to reclaim VMEM for bigger row tiles.
                return pl.BlockSpec(shape, lambda i: (0,) * len(shape),
                                    pipeline_mode=pl.Buffered(1))
        else:
            def resident_spec(shape):
                return pl.BlockSpec(shape, lambda i: (0,) * len(shape))

        return pl.pallas_call(
            kernel,
            out_shape=out_shapes,
            grid_spec=pltpu.PrefetchScalarGridSpec(
                num_scalar_prefetch=0,
                grid=grid,
                in_specs=make_in_specs(resident_spec),
                out_specs=out_specs,
            ),
            compiler_params=pltpu.CompilerParams(
                dimension_semantics=("parallel",),
                vmem_limit_bytes=int(vmem_limit)),
        )(*operands)

    try:
        h1_t, h2_t, h3_t = run(True)
    except Exception:
        # pl.Buffered(1) single-buffering of resident blocks is not supported
        # on every JAX build; fall back to default double-buffering.
        h1_t, h2_t, h3_t = run(False)

    if feature_major_out:
        # Hand feature-major (feat, rows) slabs straight to a consumer that can
        # use them -- avoids three XLA transposes over the full output stream.
        h1, h2, h3 = h1_t[:, :n_rows], h2_t[:, :n_rows], h3_t[:, :n_rows]
    else:
        # Layout plumbing back to the module's node-major convention.
        h1, h2, h3 = h1_t[:, :n_rows].T, h2_t[:, :n_rows].T, h3_t[:, :n_rows].T
    return h3, [h1, h2, h3]


# ----------------------- deterministic parameter init -----------------------

def xavier_uniform(key, shape, gain):
    fan_in, fan_out = shape[0], shape[1]
    bound = gain * math.sqrt(6.0 / (fan_in + fan_out))
    return jax.random.uniform(key, shape, jnp.float32, -bound, bound)


def kaiming_uniform_fan_in(key, shape_in_out):
    # shape stored as (in_features, out_features); fan_in = in_features.
    fan_in = shape_in_out[0]
    gain = math.sqrt(2.0)  # calculate_gain('leaky_relu', a=0) in torch
    bound = gain * math.sqrt(3.0 / fan_in)
    return jax.random.uniform(key, shape_in_out, jnp.float32, -bound, bound)


def init_params(key, nbr_nodes, in_channels, hid_channels, out_channels):
    k_imp, k1, k2, k3 = jax.random.split(key, 4)
    imp_features = xavier_uniform(k_imp, (nbr_nodes, in_channels), gain=1.414)
    w1 = kaiming_uniform_fan_in(k1, (in_channels, hid_channels))
    b1 = jnp.zeros((hid_channels,), jnp.float32)
    w2 = kaiming_uniform_fan_in(k2, (hid_channels, hid_channels))
    b2 = jnp.zeros((hid_channels,), jnp.float32)
    w3 = kaiming_uniform_fan_in(k3, (hid_channels, out_channels))
    b3 = jnp.zeros((out_channels,), jnp.float32)
    return imp_features, (w1, b1, w2, b2, w3, b3)


# --------------------------------- reference ---------------------------------

def reference_forward(x, idx, imp_features, params):
    w1, b1, w2, b2, w3, b3 = params
    xf = jnp.where(jnp.isnan(x), imp_features[idx], x)
    h1 = xf @ w1 + b1
    h2 = jax.nn.leaky_relu(h1 @ w2 + b2, NEG_SLOPE)
    h3 = jax.nn.leaky_relu(h2 @ w3 + b3, NEG_SLOPE)
    return h3, [h1, h2, h3]


if __name__ == "__main__":
    # Small shapes: 8 rows (nnz of pe_feat), 16 graph nodes, 4 in, 32 hid, 4 out.
    nbr_nodes, n_rows, in_channels, hid_channels, out_channels = 16, 8, 4, 32, 4

    key = jax.random.PRNGKey(0)
    k_params, k_x, k_nan, k_idx = jax.random.split(key, 4)

    imp_features, params = init_params(
        k_params, nbr_nodes, in_channels, hid_channels, out_channels)

    # Input features with some NaN holes to exercise the imputation path.
    x = jax.random.normal(k_x, (n_rows, in_channels), jnp.float32)
    nan_mask = jax.random.bernoulli(k_nan, 0.3, (n_rows, in_channels))
    x = jnp.where(nan_mask, jnp.nan, x)

    # pe_feat._indices()[1]: one imp_features row index per input row.
    idx = jax.random.randint(k_idx, (n_rows,), 0, nbr_nodes)

    h3_ref, mids_ref = reference_forward(x, idx, imp_features, params)

    # Primary path: in-kernel one-hot gather of the imputation rows.
    h3, mids = teacher_features_forward(x, idx, imp_features, params)
    jax.block_until_ready(h3)
    for got, want in zip([h3] + mids, [h3_ref] + mids_ref):
        assert got.shape == want.shape, "shape mismatch vs reference"
        assert jnp.allclose(got, want, atol=1e-5, rtol=1e-5), "mismatch vs reference"

    # Fallback path (large-graph case): pre-gathered, single stacked input stream.
    h3b, midsb = teacher_features_forward(
        x, idx, imp_features, params, gather_in_kernel=False)
    jax.block_until_ready(h3b)
    for got, want in zip([h3b] + midsb, [h3_ref] + mids_ref):
        assert got.shape == want.shape, "shape mismatch vs reference (fallback)"
        assert jnp.allclose(got, want, atol=1e-5, rtol=1e-5), "mismatch vs reference (fallback)"

    print("KERNEL_OK")
</pallas_src>

<mosaic_0001>
module attributes {stable_mosaic.version = 11 : i64} {
  func.func @teacher_gather_kernel(%arg0: i32, %arg1: memref<4x128xf32, #tpu.memory_space<vmem>>, %arg2: memref<1x128xi32, #tpu.memory_space<vmem>>, %arg3: memref<4x16xf32, #tpu.memory_space<vmem>>, %arg4: memref<32x4xf32, #tpu.memory_space<vmem>>, %arg5: memref<32x1xf32, #tpu.memory_space<vmem>>, %arg6: memref<32x32xf32, #tpu.memory_space<vmem>>, %arg7: memref<32x1xf32, #tpu.memory_space<vmem>>, %arg8: memref<4x32xf32, #tpu.memory_space<vmem>>, %arg9: memref<4x1xf32, #tpu.memory_space<vmem>>, %arg10: memref<32x128xf32, #tpu.memory_space<vmem>>, %arg11: memref<32x128xf32, #tpu.memory_space<vmem>>, %arg12: memref<4x128xf32, #tpu.memory_space<vmem>>) attributes {dimension_semantics = [#tpu.dimension_semantics<parallel>], iteration_bounds = array<i64: 1>, scalar_prefetch = 0 : i64, scratch_operands = 0 : i64, tpu.core_type = #tpu.core_type<tc>, window_params = [{transform_indices = @transform_0, window_bounds = array<i64: 4, 128>}, {transform_indices = @transform_1, window_bounds = array<i64: 1, 128>}, {pipeline_mode = #tpu.pipeline_mode<synchronous>, transform_indices = @transform_2, window_bounds = array<i64: 4, 16>}, {pipeline_mode = #tpu.pipeline_mode<synchronous>, transform_indices = @transform_3, window_bounds = array<i64: 32, 4>}, {pipeline_mode = #tpu.pipeline_mode<synchronous>, transform_indices = @transform_4, window_bounds = array<i64: 32, 1>}, {pipeline_mode = #tpu.pipeline_mode<synchronous>, transform_indices = @transform_5, window_bounds = array<i64: 32, 32>}, {pipeline_mode = #tpu.pipeline_mode<synchronous>, transform_indices = @transform_6, window_bounds = array<i64: 32, 1>}, {pipeline_mode = #tpu.pipeline_mode<synchronous>, transform_indices = @transform_7, window_bounds = array<i64: 4, 32>}, {pipeline_mode = #tpu.pipeline_mode<synchronous>, transform_indices = @transform_8, window_bounds = array<i64: 4, 1>}, {transform_indices = @transform_9, window_bounds = array<i64: 32, 128>}, {transform_indices = @transform_10, window_bounds = array<i64: 32, 128>}, {transform_indices = @transform_11, window_bounds = array<i64: 4, 128>}]} {
    %c0 = arith.constant 0 : index
    %c0_0 = arith.constant 0 : index
    %0 = vector.load %arg1[%c0, %c0_0] : memref<4x128xf32, #tpu.memory_space<vmem>>, vector<4x128xf32>
    %1 = tpu.iota {dimensions = array<i32: 0>} : vector<16x128xi32>
    %c0_1 = arith.constant 0 : index
    %c0_2 = arith.constant 0 : index
    %2 = vector.load %arg2[%c0_1, %c0_2] : memref<1x128xi32, #tpu.memory_space<vmem>>, vector<1x128xi32>
    %3 = vector.broadcast %2 : vector<1x128xi32> to vector<16x128xi32>
    %4 = arith.cmpi eq, %1, %3 : vector<16x128xi32>
    %5 = arith.extui %4 : vector<16x128xi1> to vector<16x128xi32>
    %6 = arith.sitofp %5 : vector<16x128xi32> to vector<16x128xf32>
    %c0_3 = arith.constant 0 : index
    %c0_4 = arith.constant 0 : index
    %7 = vector.load %arg3[%c0_3, %c0_4] : memref<4x16xf32, #tpu.memory_space<vmem>>, vector<4x16xf32>
    %cst = arith.constant dense<0.000000e+00> : vector<4x128xf32>
    %8 = tpu.matmul %7, %6, %cst {dimension_numbers = #tpu.dot_dimension_numbers<[1], [0], [0], [1], [0, 0, 1, 1], [], []>} : vector<4x16xf32>, vector<16x128xf32>, vector<4x128xf32> -> vector<4x128xf32>
    %9 = arith.cmpf one, %0, %0 : vector<4x128xf32>
    %10 = arith.select %9, %8, %0 : vector<4x128xi1>, vector<4x128xf32>
    %c0_5 = arith.constant 0 : index
    %c0_6 = arith.constant 0 : index
    %11 = vector.load %arg4[%c0_5, %c0_6] : memref<32x4xf32, #tpu.memory_space<vmem>>, vector<32x4xf32>
    %cst_7 = arith.constant dense<0.000000e+00> : vector<32x128xf32>
    %12 = tpu.matmul %11, %10, %cst_7 {dimension_numbers = #tpu.dot_dimension_numbers<[1], [0], [0], [1], [0, 0, 1, 1], [], []>} : vector<32x4xf32>, vector<4x128xf32>, vector<32x128xf32> -> vector<32x128xf32>
    %c0_8 = arith.constant 0 : index
    %c0_9 = arith.constant 0 : index
    %13 = vector.load %arg5[%c0_8, %c0_9] : memref<32x1xf32, #tpu.memory_space<vmem>>, vector<32x1xf32>
    %14 = vector.broadcast %13 : vector<32x1xf32> to vector<32x128xf32>
    %15 = arith.addf %12, %14 : vector<32x128xf32>
    %c0_10 = arith.constant 0 : index
    %c0_11 = arith.constant 0 : index
    %16 = vector.load %arg10[%c0_10, %c0_11] : memref<32x128xf32, #tpu.memory_space<vmem>>, vector<32x128xf32>
    tpu.vector_store %arg10[%c0_10, %c0_11], %15 {strides = array<i32>} : memref<32x128xf32, #tpu.memory_space<vmem>>, vector<32x128xf32>,
    %c0_12 = arith.constant 0 : index
    %c0_13 = arith.constant 0 : index
    %17 = vector.load %arg6[%c0_12, %c0_13] : memref<32x32xf32, #tpu.memory_space<vmem>>, vector<32x32xf32>
    %cst_14 = arith.constant dense<0.000000e+00> : vector<32x128xf32>
    %18 = tpu.matmul %17, %15, %cst_14 {dimension_numbers = #tpu.dot_dimension_numbers<[1], [0], [0], [1], [0, 0, 1, 1], [], []>} : vector<32x32xf32>, vector<32x128xf32>, vector<32x128xf32> -> vector<32x128xf32>
    %c0_15 = arith.constant 0 : index
    %c0_16 = arith.constant 0 : index
    %19 = vector.load %arg7[%c0_15, %c0_16] : memref<32x1xf32, #tpu.memory_space<vmem>>, vector<32x1xf32>
    %20 = vector.broadcast %19 : vector<32x1xf32> to vector<32x128xf32>
    %21 = arith.addf %18, %20 : vector<32x128xf32>
    %cst_17 = arith.constant 0.00999999977 : f32
    %22 = vector.broadcast %cst_17 : f32 to vector<32x128xf32>
    %23 = arith.mulf %22, %21 : vector<32x128xf32>
    %24 = arith.maximumf %21, %23 : vector<32x128xf32>
    %c0_18 = arith.constant 0 : index
    %c0_19 = arith.constant 0 : index
    %25 = vector.load %arg11[%c0_18, %c0_19] : memref<32x128xf32, #tpu.memory_space<vmem>>, vector<32x128xf32>
    tpu.vector_store %arg11[%c0_18, %c0_19], %24 {strides = array<i32>} : memref<32x128xf32, #tpu.memory_space<vmem>>, vector<32x128xf32>,
    %c0_20 = arith.constant 0 : index
    %c0_21 = arith.constant 0 : index
    %26 = vector.load %arg8[%c0_20, %c0_21] : memref<4x32xf32, #tpu.memory_space<vmem>>, vector<4x32xf32>
    %cst_22 = arith.constant dense<0.000000e+00> : vector<4x128xf32>
    %27 = tpu.matmul %26, %24, %cst_22 {dimension_numbers = #tpu.dot_dimension_numbers<[1], [0], [0], [1], [0, 0, 1, 1], [], []>} : vector<4x32xf32>, vector<32x128xf32>, vector<4x128xf32> -> vector<4x128xf32>
    %c0_23 = arith.constant 0 : index
    %c0_24 = arith.constant 0 : index
    %28 = vector.load %arg9[%c0_23, %c0_24] : memref<4x1xf32, #tpu.memory_space<vmem>>, vector<4x1xf32>
    %29 = vector.broadcast %28 : vector<4x1xf32> to vector<4x128xf32>
    %30 = arith.addf %27, %29 : vector<4x128xf32>
    %cst_25 = arith.constant 0.00999999977 : f32
    %31 = vector.broadcast %cst_25 : f32 to vector<4x128xf32>
    %32 = arith.mulf %31, %30 : vector<4x128xf32>
    %33 = arith.maximumf %30, %32 : vector<4x128xf32>
    %c0_26 = arith.constant 0 : index
    %c0_27 = arith.constant 0 : index
    %34 = vector.load %arg12[%c0_26, %c0_27] : memref<4x128xf32, #tpu.memory_space<vmem>>, vector<4x128xf32>
    tpu.vector_store %arg12[%c0_26, %c0_27], %33 {strides = array<i32>} : memref<4x128xf32, #tpu.memory_space<vmem>>, vector<4x128xf32>,
    return
  }
  func.func @transform_0(%arg0: i32) -> (i32, i32) {
    %c0_i32 = arith.constant 0 : i32
    %c0_i32_0 = arith.constant 0 : i32
    return %c0_i32, %arg0 : i32, i32
  }
  func.func @transform_1(%arg0: i32) -> (i32, i32) {
    %c0_i32 = arith.constant 0 : i32
    %c0_i32_0 = arith.constant 0 : i32
    return %c0_i32, %arg0 : i32, i32
  }
  func.func @transform_2(%arg0: i32) -> (i32, i32) {
    %c0_i32 = arith.constant 0 : i32
    %c0_i32_0 = arith.constant 0 : i32
    %c0_i32_1 = arith.constant 0 : i32
    return %c0_i32, %c0_i32_0 : i32, i32
  }
  func.func @transform_3(%arg0: i32) -> (i32, i32) {
    %c0_i32 = arith.constant 0 : i32
    %c0_i32_0 = arith.constant 0 : i32
    %c0_i32_1 = arith.constant 0 : i32
    return %c0_i32, %c0_i32_0 : i32, i32
  }
  func.func @transform_4(%arg0: i32) -> (i32, i32) {
    %c0_i32 = arith.constant 0 : i32
    %c0_i32_0 = arith.constant 0 : i32
    %c0_i32_1 = arith.constant 0 : i32
    return %c0_i32, %c0_i32_0 : i32, i32
  }
  func.func @transform_5(%arg0: i32) -> (i32, i32) {
    %c0_i32 = arith.constant 0 : i32
    %c0_i32_0 = arith.constant 0 : i32
    %c0_i32_1 = arith.constant 0 : i32
    return %c0_i32, %c0_i32_0 : i32, i32
  }
  func.func @transform_6(%arg0: i32) -> (i32, i32) {
    %c0_i32 = arith.constant 0 : i32
    %c0_i32_0 = arith.constant 0 : i32
    %c0_i32_1 = arith.constant 0 : i32
    return %c0_i32, %c0_i32_0 : i32, i32
  }
  func.func @transform_7(%arg0: i32) -> (i32, i32) {
    %c0_i32 = arith.constant 0 : i32
    %c0_i32_0 = arith.constant 0 : i32
    %c0_i32_1 = arith.constant 0 : i32
    return %c0_i32, %c0_i32_0 : i32, i32
  }
  func.func @transform_8(%arg0: i32) -> (i32, i32) {
    %c0_i32 = arith.constant 0 : i32
    %c0_i32_0 = arith.constant 0 : i32
    %c0_i32_1 = arith.constant 0 : i32
    return %c0_i32, %c0_i32_0 : i32, i32
  }
  func.func @transform_9(%arg0: i32) -> (i32, i32) {
    %c0_i32 = arith.constant 0 : i32
    %c0_i32_0 = arith.constant 0 : i32
    return %c0_i32, %arg0 : i32, i32
  }
  func.func @transform_10(%arg0: i32) -> (i32, i32) {
    %c0_i32 = arith.constant 0 : i32
    %c0_i32_0 = arith.constant 0 : i32
    return %c0_i32, %arg0 : i32, i32
  }
  func.func @transform_11(%arg0: i32) -> (i32, i32) {
    %c0_i32 = arith.constant 0 : i32
    %c0_i32_0 = arith.constant 0 : i32
    return %c0_i32, %arg0 : i32, i32
  }
}

module attributes {stable_mosaic.version = 11 : i64} {
  func.func @teacher_gather_kernel(%arg0: i32, %arg1: memref<4x128xf32, #tpu.memory_space<vmem>>, %arg2: memref<1x128xi32, #tpu.memory_space<vmem>>, %arg3: memref<4x16xf32, #tpu.memory_space<vmem>>, %arg4: memref<32x4xf32, #tpu.memory_space<vmem>>, %arg5: memref<32x1xf32, #tpu.memory_space<vmem>>, %arg6: memref<32x32xf32, #tpu.memory_space<vmem>>, %arg7: memref<32x1xf32, #tpu.memory_space<vmem>>, %arg8: memref<4x32xf32, #tpu.memory_space<vmem>>, %arg9: memref<4x1xf32, #tpu.memory_space<vmem>>, %arg10: memref<32x128xf32, #tpu.memory_space<vmem>>, %arg11: memref<32x128xf32, #tpu.memory_space<vmem>>, %arg12: memref<4x128xf32, #tpu.memory_space<vmem>>) attributes {dimension_semantics = [#tpu.dimension_semantics<parallel>], iteration_bounds = array<i64: 1>, scalar_prefetch = 0 : i64, scratch_operands = 0 : i64, tpu.core_type = #tpu.core_type<tc>, window_params = [{transform_indices = @transform_0, window_bounds = array<i64: 4, 128>}, {transform_indices = @transform_1, window_bounds = array<i64: 1, 128>}, {pipeline_mode = #tpu.pipeline_mode<synchronous>, transform_indices = @transform_2, window_bounds = array<i64: 4, 16>}, {pipeline_mode = #tpu.pipeline_mode<synchronous>, transform_indices = @transform_3, window_bounds = array<i64: 32, 4>}, {pipeline_mode = #tpu.pipeline_mode<synchronous>, transform_indices = @transform_4, window_bounds = array<i64: 32, 1>}, {pipeline_mode = #tpu.pipeline_mode<synchronous>, transform_indices = @transform_5, window_bounds = array<i64: 32, 32>}, {pipeline_mode = #tpu.pipeline_mode<synchronous>, transform_indices = @transform_6, window_bounds = array<i64: 32, 1>}, {pipeline_mode = #tpu.pipeline_mode<synchronous>, transform_indices = @transform_7, window_bounds = array<i64: 4, 32>}, {pipeline_mode = #tpu.pipeline_mode<synchronous>, transform_indices = @transform_8, window_bounds = array<i64: 4, 1>}, {transform_indices = @transform_9, window_bounds = array<i64: 32, 128>}, {transform_indices = @transform_10, window_bounds = array<i64: 32, 128>}, {transform_indices = @transform_11, window_bounds = array<i64: 4, 128>}]} {
    %c0 = arith.constant 0 : index
    %c0_0 = arith.constant 0 : index
    %0 = vector.load %arg1[%c0, %c0_0] : memref<4x128xf32, #tpu.memory_space<vmem>>, vector<4x128xf32>
    %1 = tpu.iota {dimensions = array<i32: 0>} : vector<16x128xi32>
    %c0_1 = arith.constant 0 : index
    %c0_2 = arith.constant 0 : index
    %2 = vector.load %arg2[%c0_1, %c0_2] : memref<1x128xi32, #tpu.memory_space<vmem>>, vector<1x128xi32>
    %3 = vector.broadcast %2 : vector<1x128xi32> to vector<16x128xi32>
    %4 = arith.cmpi eq, %1, %3 : vector<16x128xi32>
    %5 = arith.extui %4 : vector<16x128xi1> to vector<16x128xi32>
    %6 = arith.sitofp %5 : vector<16x128xi32> to vector<16x128xf32>
    %c0_3 = arith.constant 0 : index
    %c0_4 = arith.constant 0 : index
    %7 = vector.load %arg3[%c0_3, %c0_4] : memref<4x16xf32, #tpu.memory_space<vmem>>, vector<4x16xf32>
    %cst = arith.constant dense<0.000000e+00> : vector<4x128xf32>
    %8 = tpu.matmul %7, %6, %cst {dimension_numbers = #tpu.dot_dimension_numbers<[1], [0], [0], [1], [0, 0, 1, 1], [], []>} : vector<4x16xf32>, vector<16x128xf32>, vector<4x128xf32> -> vector<4x128xf32>
    %9 = arith.cmpf one, %0, %0 : vector<4x128xf32>
    %10 = arith.select %9, %8, %0 : vector<4x128xi1>, vector<4x128xf32>
    %c0_5 = arith.constant 0 : index
    %c0_6 = arith.constant 0 : index
    %11 = vector.load %arg4[%c0_5, %c0_6] : memref<32x4xf32, #tpu.memory_space<vmem>>, vector<32x4xf32>
    %cst_7 = arith.constant dense<0.000000e+00> : vector<32x128xf32>
    %12 = tpu.matmul %11, %10, %cst_7 {dimension_numbers = #tpu.dot_dimension_numbers<[1], [0], [0], [1], [0, 0, 1, 1], [], []>} : vector<32x4xf32>, vector<4x128xf32>, vector<32x128xf32> -> vector<32x128xf32>
    %c0_8 = arith.constant 0 : index
    %c0_9 = arith.constant 0 : index
    %13 = vector.load %arg5[%c0_8, %c0_9] : memref<32x1xf32, #tpu.memory_space<vmem>>, vector<32x1xf32>
    %14 = vector.broadcast %13 : vector<32x1xf32> to vector<32x128xf32>
    %15 = arith.addf %12, %14 : vector<32x128xf32>
    %c0_10 = arith.constant 0 : index
    %c0_11 = arith.constant 0 : index
    %16 = vector.load %arg10[%c0_10, %c0_11] : memref<32x128xf32, #tpu.memory_space<vmem>>, vector<32x128xf32>
    tpu.vector_store %arg10[%c0_10, %c0_11], %15 {strides = array<i32>} : memref<32x128xf32, #tpu.memory_space<vmem>>, vector<32x128xf32>,
    %c0_12 = arith.constant 0 : index
    %c0_13 = arith.constant 0 : index
    %17 = vector.load %arg6[%c0_12, %c0_13] : memref<32x32xf32, #tpu.memory_space<vmem>>, vector<32x32xf32>
    %cst_14 = arith.constant dense<0.000000e+00> : vector<32x128xf32>
    %18 = tpu.matmul %17, %15, %cst_14 {dimension_numbers = #tpu.dot_dimension_numbers<[1], [0], [0], [1], [0, 0, 1, 1], [], []>} : vector<32x32xf32>, vector<32x128xf32>, vector<32x128xf32> -> vector<32x128xf32>
    %c0_15 = arith.constant 0 : index
    %c0_16 = arith.constant 0 : index
    %19 = vector.load %arg7[%c0_15, %c0_16] : memref<32x1xf32, #tpu.memory_space<vmem>>, vector<32x1xf32>
    %20 = vector.broadcast %19 : vector<32x1xf32> to vector<32x128xf32>
    %21 = arith.addf %18, %20 : vector<32x128xf32>
    %cst_17 = arith.constant 0.00999999977 : f32
    %22 = vector.broadcast %cst_17 : f32 to vector<32x128xf32>
    %23 = arith.mulf %22, %21 : vector<32x128xf32>
    %24 = arith.maximumf %21, %23 : vector<32x128xf32>
    %c0_18 = arith.constant 0 : index
    %c0_19 = arith.constant 0 : index
    %25 = vector.load %arg11[%c0_18, %c0_19] : memref<32x128xf32, #tpu.memory_space<vmem>>, vector<32x128xf32>
    tpu.vector_store %arg11[%c0_18, %c0_19], %24 {strides = array<i32>} : memref<32x128xf32, #tpu.memory_space<vmem>>, vector<32x128xf32>,
    %c0_20 = arith.constant 0 : index
    %c0_21 = arith.constant 0 : index
    %26 = vector.load %arg8[%c0_20, %c0_21] : memref<4x32xf32, #tpu.memory_space<vmem>>, vector<4x32xf32>
    %cst_22 = arith.constant dense<0.000000e+00> : vector<4x128xf32>
    %27 = tpu.matmul %26, %24, %cst_22 {dimension_numbers = #tpu.dot_dimension_numbers<[1], [0], [0], [1], [0, 0, 1, 1], [], []>} : vector<4x32xf32>, vector<32x128xf32>, vector<4x128xf32> -> vector<4x128xf32>
    %c0_23 = arith.constant 0 : index
    %c0_24 = arith.constant 0 : index
    %28 = vector.load %arg9[%c0_23, %c0_24] : memref<4x1xf32, #tpu.memory_space<vmem>>, vector<4x1xf32>
    %29 = vector.broadcast %28 : vector<4x1xf32> to vector<4x128xf32>
    %30 = arith.addf %27, %29 : vector<4x128xf32>
    %cst_25 = arith.constant 0.00999999977 : f32
    %31 = vector.broadcast %cst_25 : f32 to vector<4x128xf32>
    %32 = arith.mulf %31, %30 : vector<4x128xf32>
    %33 = arith.maximumf %30, %32 : vector<4x128xf32>
    %c0_26 = arith.constant 0 : index
    %c0_27 = arith.constant 0 : index
    %34 = vector.load %arg12[%c0_26, %c0_27] : memref<4x128xf32, #tpu.memory_space<vmem>>, vector<4x128xf32>
    tpu.vector_store %arg12[%c0_26, %c0_27], %33 {strides = array<i32>} : memref<4x128xf32, #tpu.memory_space<vmem>>, vector<4x128xf32>,
    return
  }
  func.func @transform_0(%arg0: i32) -> (i32, i32) {
    %c0_i32 = arith.constant 0 : i32
    %c0_i32_0 = arith.constant 0 : i32
    return %c0_i32, %arg0 : i32, i32
  }
  func.func @transform_1(%arg0: i32) -> (i32, i32) {
    %c0_i32 = arith.constant 0 : i32
    %c0_i32_0 = arith.constant 0 : i32
    return %c0_i32, %arg0 : i32, i32
  }
  func.func @transform_2(%arg0: i32) -> (i32, i32) {
    %c0_i32 = arith.constant 0 : i32
    %c0_i32_0 = arith.constant 0 : i32
    %c0_i32_1 = arith.constant 0 : i32
    return %c0_i32, %c0_i32_0 : i32, i32
  }
  func.func @transform_3(%arg0: i32) -> (i32, i32) {
    %c0_i32 = arith.constant 0 : i32
    %c0_i32_0 = arith.constant 0 : i32
    %c0_i32_1 = arith.constant 0 : i32
    return %c0_i32, %c0_i32_0 : i32, i32
  }
  func.func @transform_4(%arg0: i32) -> (i32, i32) {
    %c0_i32 = arith.constant 0 : i32
    %c0_i32_0 = arith.constant 0 : i32
    %c0_i32_1 = arith.constant 0 : i32
    return %c0_i32, %c0_i32_0 : i32, i32
  }
  func.func @transform_5(%arg0: i32) -> (i32, i32) {
    %c0_i32 = arith.constant 0 : i32
    %c0_i32_0 = arith.constant 0 : i32
    %c0_i32_1 = arith.constant 0 : i32
    return %c0_i32, %c0_i32_0 : i32, i32
  }
  func.func @transform_6(%arg0: i32) -> (i32, i32) {
    %c0_i32 = arith.constant 0 : i32
    %c0_i32_0 = arith.constant 0 : i32
    %c0_i32_1 = arith.constant 0 : i32
    return %c0_i32, %c0_i32_0 : i32, i32
  }
  func.func @transform_7(%arg0: i32) -> (i32, i32) {
    %c0_i32 = arith.constant 0 : i32
    %c0_i32_0 = arith.constant 0 : i32
    %c0_i32_1 = arith.constant 0 : i32
    return %c0_i32, %c0_i32_0 : i32, i32
  }
  func.func @transform_8(%arg0: i32) -> (i32, i32) {
    %c0_i32 = arith.constant 0 : i32
    %c0_i32_0 = arith.constant 0 : i32
    %c0_i32_1 = arith.constant 0 : i32
    return %c0_i32, %c0_i32_0 : i32, i32
  }
  func.func @transform_9(%arg0: i32) -> (i32, i32) {
    %c0_i32 = arith.constant 0 : i32
    %c0_i32_0 = arith.constant 0 : i32
    return %c0_i32, %arg0 : i32, i32
  }
  func.func @transform_10(%arg0: i32) -> (i32, i32) {
    %c0_i32 = arith.constant 0 : i32
    %c0_i32_0 = arith.constant 0 : i32
    return %c0_i32, %arg0 : i32, i32
  }
  func.func @transform_11(%arg0: i32) -> (i32, i32) {
    %c0_i32 = arith.constant 0 : i32
    %c0_i32_0 = arith.constant 0 : i32
    return %c0_i32, %arg0 : i32, i32
  }
}

</mosaic_0001>

<bundles_post_ra>
// kernel: tpu_custom_call.1
= control target key start
LH: loop header
LB: loop body
LE: loop exit
PB: predicated region body
PF: predicated region fallthrough
CT: control target
= control target key end

     0   :  { %17 = vsyncpa [#allocation3], 0  ;;  %v38_v0 = vlaneseq  ;;  %v705_v1 = vmov 0.0|0.0   ;;  %s893_s0 = inlined_call_operand.vmem [shape: f32[4,128], index: 0, kind: input, shape index: {}]   ;;  %s894_s1 = inlined_call_operand.vmem [shape: s32[1,128], index: 1, kind: input, shape index: {}]   ;;  %s895_s2 = inlined_call_operand.vmem [shape: f32[4,16], index: 2, kind: input, shape index: {}]   ;;  %s896_s3 = inlined_call_operand.vmem [shape: f32[32,4], index: 3, kind: input, shape index: {}]   ;;  %s897_s4 = inlined_call_operand.vmem [shape: f32[32,1], index: 4, kind: input, shape index: {}]   ;;  %s898_s5 = inlined_call_operand.vmem [shape: f32[32,32], index: 5, kind: input, shape index: {}]   ;;  %s899_s6 = inlined_call_operand.vmem [shape: f32[32,1], index: 6, kind: input, shape index: {}]   ;;  %s900_s7 = inlined_call_operand.vmem [shape: f32[4,32], index: 7, kind: input, shape index: {}]   ;;  %s901_s8 = inlined_call_operand.vmem [shape: f32[4,1], index: 8, kind: input, shape index: {}]   ;;  %s902_s9 = inlined_call_operand.hbm [shape: f32[32,128], index: 9, kind: output, shape index: {0}]   ;;  %s903_s10 = inlined_call_operand.hbm [shape: f32[32,128], index: 10, kind: output, shape index: {1}]   ;;  %s904_s11 = inlined_call_operand.hbm [shape: f32[4,128], index: 11, kind: output, shape index: {2}]  }
   0x1   :  { %606 = vmatprep.subr.bf16.mxu0 %v705_v1  ;;  %v529_v2 = vld [vmem:[%s894_s1] ss:$0 sm:$0xff] }
   0x2   :  { %18 = vsyncpa [#allocation5], 0  ;;  %v39_v3 = vshrl.u32 %v38_v0, 7  ;;  %vm706_vm0 = vmmov 0   ;;  %v707_v4 = vmov 0.0   ;;  %vm53_vm4 = vcmask 130048  }
   0x3   :  { %570 = vmatprep.mubr.msk.f32.mxu0 %vm706_vm0, %v707_v4  ;;  %v708_v6 = vmov 1.0|1.0   ;;  %v52_v7 = vld [vmem:[%s895_s2] sm:$0xf]  ;;  %vm157_vm5 = vcmask 31744   ;;  %v135_v10 = vld [vmem:[%s897_s4 + $0x10] sm:$0xff] }
   0x4   :  { %v40_v5 = vadd.s32 8, %v39_v3  ;;  %vm46_vm1 = vcmp.eq.s32.totalorder %v39_v3, %v529_v2  ;;  %v129_v8 = vld [vmem:[%s896_s3] sm:$0xff]  ;;  %v709_v11 = vmov 0   ;;  %v134_v12 = vld [vmem:[%s897_s4 + $0x8] sm:$0xff]  ;;  %v136_v13 = vld [vmem:[%s897_s4 + $0x18] sm:$0xff]  ;;  %vm170_vm7 = vcmask 1043456  }
   0x5   :  { %575 = vmatprep.mubr.msk.f32.mxu1 %vm157_vm5, %v129_v8  ;;  %v133_v9 = vld [vmem:[%s897_s4] sm:$0xff]  ;;  %633 = vset.pattern.permute.xlu0 %v709_v11  ;;  %v268_v15 = vld [vmem:[%s899_s6 + $0x8] sm:$0xff]  ;;  %v269_v16 = vld [vmem:[%s899_s6 + $0x10] sm:$0xff]  ;;  %vm291_vm8 = vcmask 261120   ;;  %s710_s30 = smov [#allocation4]   ;;  %s711_s13 = smov [#allocation2]  }
   0x6   :  { %vm47_vm2 = vcmp.eq.s32.totalorder %v40_v5, %v529_v2  ;;  %634 = vset.pattern.permute.xlu1 %v709_v11  ;;  %139 = vperm.xlu0 %633, %v133_v9   ;;  %v267_v14 = vld [vmem:[%s899_s6] sm:$0xff]  ;;  %v270_v17 = vld [vmem:[%s899_s6 + $0x18] sm:$0xff]  ;;  %v130_v23 = vld [vmem:[%s896_s3 + $0x8] sm:$0xff]  ;;  %s501_s12 = sshll.u32 %s710_s30, 4  ;;  %s489_s14 = sshll.u32 %s711_s13, 4  ;;  %s502_s12 = int_to_ptr.vmem [resolvable:$true] %s501_s12  ;;  %s850_s14 = int_to_ptr.vmem [resolvable:$true] %s489_s14 }
   0x7   :  { %vm607_vm3 = vmpackc.low %vm47_vm2, %vm46_vm1  ;;  %149 = vperm.xlu1 %634, %v135_v10   ;;  %v402_v18 = vld [vmem:[%s901_s8] sm:$0xf]  ;;  %v131_v24 = vld [vmem:[%s896_s3 + $0x10] sm:$0xff]  ;;  %s635_s15 = scalar_lea.vmem %s502_s12, 512  ;;  %p640_p1 = scmp.lt.s32.totalorder %s502_s12, %s502_s12 }
   0x8   :  { %608 = vmatpush3.bf16.msk.msra.mxu0 %vm607_vm3, %v708_v6  ;;  %v37_v19 = vld [vmem:[%s893_s0] sm:$0xf]  ;;  %v132_v25 = vld [vmem:[%s896_s3 + $0x18] sm:$0xff]  ;;  %v264_v41 = vld [vmem:[%s898_s5 + $0x8] sm:$0xff]  ;;  %p636_p0 = scmp.ne.s32.totalorder %s502_s12, %s635_s15  ;;  %p641_p2 = scmp.lt.s32.totalorder %s635_s15, %s635_s15 }
   0x9   :  { %617 = vmatprep.subr.bf16.mxu0 %v705_v1  ;;  %vm127_vm6 = vcmp.ne.f32.partialorder %v37_v19, %v37_v19  ;;  %v263_v26 = vld [vmem:[%s898_s5] sm:$0xff]  ;;  %v265_v42 = vld [vmem:[%s898_s5 + $0x10] sm:$0xff]  ;;  %v266_v43 = vld [vmem:[%s898_s5 + $0x18] sm:$0xff] }
   0xa   :  { %144 = vperm.xlu0 %633, %v134_v12   ;;  %v401_v3 = vld [vmem:[%s900_s7] sm:$0xf]  ;;  %p642_p3 = por %p641_p2, %p640_p1 }
   0xb   :  { %571 = vmatmul.mubr.msk.f32.vlgmr.msra.gmra.mrb[0].mxu0 %vm53_vm4, %v52_v7  ;;  %154 = vperm.xlu1 %634, %v136_v13  }
   0xc   :  { %603 = vmatprep.mubr.msk.f32.mxu0 %vm706_vm0, %v707_v4  ;;  %p643_p4 = pnand %p642_p3, %p636_p0 }
   0xe   :  { %273 = vperm.xlu0 %633, %v267_v14  }
   0xf   :  { %278 = vperm.xlu1 %634, %v268_v15  }
  0x12   :  { %283 = vperm.xlu0 %633, %v269_v16  }
  0x13   :  { %288 = vperm.xlu1 %634, %v270_v17  }
  0x16   :  { %405 = vperm.xlu0 %633, %v402_v18  }
  0x85   :  { %v140_v27 = vpop.permute.xlu0 %139 }
  0x86   :  { %v150_v28 = vpop.permute.xlu1 %149 }
  0x89   :  { %v145_v29 = vpop.permute.xlu0 %144 }
  0x8a   :  { %v155_v34 = vpop.permute.xlu1 %154 }
  0x8d   :  { %v274_v45 = vpop.permute.xlu0 %273 }
  0x8e   :  { %v279_v44 = vpop.permute.xlu1 %278 }
  0x91   :  { %v284_v54 = vpop.permute.xlu0 %283 }
  0x92   :  { %v289_v51 = vpop.permute.xlu1 %288 }
  0xde   :  { %v123_v20 = vpop.f32.mrb[0].mxu0 }
  0xdf   :  { %v572_v21 = vpop.f32.mrb[1].mxu0  ;;  %v128_v22 = vsel %vm127_vm6, %v123_v20, %v37_v19 }
  0xe0   :  { %573 = vmatprep.subr.msk.mxu1 %vm170_vm7, %v128_v22 }
  0xe1   :  { %574 = vmatpush3.msk.msra.mxu1 %vm170_vm7, %v128_v22 }
  0xe2   :  { %576 = vmatmul.mubr.msk.f32.vlgmr.msra.gmra.mrb[0].mxu1 %vm157_vm5, %v130_v23 }
  0xe3   :  { %578 = vmatprep.mubr.msk.f32.mxu1 %vm157_vm5, %v131_v24 }
  0xe6   :  { %579 = vmatmul.mubr.msk.f32.gmra.mrb[2].mxu1 %vm157_vm5, %v132_v25 }
  0xe7   :  { %589 = vmatprep.mubr.msk.f32.mxu1 %vm291_vm8, %v263_v26 }
 0x1b5   :  { %v577_v30 = vpop.f32.mrb[0].mxu1 }
 0x1b6   :  { %v246_v31 = vadd.f32 %v577_v30, %v145_v29  ;;  %v240_v32 = vpop.f32.mrb[1].mxu1 }
 0x1b7   :  { %v241_v33 = vadd.f32 %v240_v32, %v140_v27 }
 0x1b8   :  { %260 = vst [vmem:[#allocation2 + $0x8] sm:$0xff] %v246_v31 }
 0x1b9   :  { %259 = vst [vmem:[#allocation2] sm:$0xff] %v241_v33  ;;  %v609_v35 = vpack.c.bf16 %v246_v31, %v241_v33  ;;  %v580_v36 = vpop.f32.mrb[2].mxu1 }
 0x1ba   :  { %v256_v37 = vadd.f32 %v580_v36, %v155_v34  ;;  %v250_v38 = vpop.f32.mrb[3].mxu1 }
 0x1bb   :  { %v251_v39 = vadd.f32 %v250_v38, %v150_v28  ;;  %610 = vmatprep.subr.bf16.mxu1 %v609_v35 }
 0x1bc   :  { %262 = vst [vmem:[#allocation2 + $0x18] sm:$0xff] %v256_v37  ;;  %612 = vmatpush3.bf16.msra.mxu1 %v609_v35 }
 0x1bd   :  { %261 = vst [vmem:[#allocation2 + $0x10] sm:$0xff] %v251_v39  ;;  %v613_v40 = vpack.c.bf16 %v256_v37, %v251_v39 }
 0x1bf   :  { %614 = vmatprep.subr.bf16.mxu1 %v613_v40 }
 0x1c0   :  { %616 = vmatpush3.bf16.msra.mxu1 %v613_v40 }
 0x1c3   :  { %590 = vmatmul.mubr.msk.f32.vlgmr.msra.gmra.mrb[4].mxu1 %vm291_vm8, %v264_v41 }
 0x1c4   :  { %592 = vmatprep.mubr.msk.f32.mxu1 %vm291_vm8, %v265_v42 }
 0x1c7   :  { %593 = vmatmul.mubr.msk.f32.gmra.mrb[6].mxu1 %vm291_vm8, %v266_v43 }
 0x296   :  { %v591_v46 = vpop.f32.mrb[4].mxu1 }
 0x297   :  { %v376_v47 = vadd.f32 %v591_v46, %v279_v44  ;;  %v370_v48 = vpop.f32.mrb[5].mxu1 }
 0x298   :  { %v371_v49 = vadd.f32 %v370_v48, %v274_v45 }
 0x299   :  { %v390_v50 = vmul.f32 0.01, %v376_v47 }
 0x29a   :  { %v389_v52 = vmul.f32 0.01, %v371_v49  ;;  %v594_v53 = vpop.f32.mrb[6].mxu1 }
 0x29b   :  { %v394_v55 = vmax.f32 %v376_v47, %v390_v50  ;;  %v386_v56 = vadd.f32 %v594_v53, %v289_v51  ;;  %v380_v57 = vpop.f32.mrb[7].mxu1 }
 0x29c   :  { %v393_v58 = vmax.f32 %v371_v49, %v389_v52  ;;  %v381_v59 = vadd.f32 %v380_v57, %v284_v54 }
 0x29d   :  { %398 = vst [vmem:[#allocation4 + $0x8] sm:$0xff] %v394_v55  ;;  %v392_v60 = vmul.f32 0.01, %v386_v56 }
 0x29e   :  { %397 = vst [vmem:[#allocation4] sm:$0xff] %v393_v58  ;;  %v618_v61 = vpack.c.bf16 %v394_v55, %v393_v58  ;;  %v391_v62 = vmul.f32 0.01, %v381_v59 }
 0x29f   :  { %v396_v63 = vmax.f32 %v386_v56, %v392_v60 }
 0x2a0   :  { %v395_v0 = vmax.f32 %v381_v59, %v391_v62  ;;  %619 = vmatpush3.bf16.msra.mxu0 %v618_v61 }
 0x2a1   :  { %400 = vst [vmem:[#allocation4 + $0x18] sm:$0xff] %v396_v63  ;;  %620 = vmatprep.subr.bf16.mxu0 %v705_v1 }
 0x2a2   :  { %399 = vst [vmem:[#allocation4 + $0x10] sm:$0xff] %v395_v0  ;;  %v621_v2 = vpack.c.bf16 %v396_v63, %v395_v0 }
 0x2a4   :  { %622 = vmatpush3.bf16.msra.mxu0 %v621_v2 }
 0x2a7   :  { %604 = vmatmul.mubr.msk.f32.vlgmr.msra.gmra.mrb[2].mxu0 %vm291_vm8, %v401_v3 }
 0x2a8   :  { %646 = shalt.err (!%p643_p4)
}
 0x2a9   :  { %s647_s7 = scalar_lea.hbm %s903_s10, 512 }
 0x2aa   :  { %p648_p5 = scmp.ne.s32.totalorder %s903_s10, %s647_s7  ;;  %p651_p6 = scmp.lt.u32.totalorder %s647_s7, %s903_s10 }
 0x2ac   :  { %p653_p7 = pnand %p651_p6, %p648_p5 }
 0x2ae   :  { %656 = shalt.err (!%p653_p7)
}
 0x2af   :  { %s712_s1 = smov 128   ;;  %s713_s21 = smov 8  }
 0x2b0   :  { %507 = dma.vmem_to_hbm [thread:$0]  %s502_s12, 512, %s903_s10, [#allocation5], %s712_s1, %s712_s1, %s713_s21  }
 0x2b1   :  { %s657_s0 = scalar_lea.vmem %s850_s14, 512  ;;  %p662_p9 = scmp.lt.s32.totalorder %s850_s14, %s850_s14 }
 0x2b2   :  { %p658_p8 = scmp.ne.s32.totalorder %s850_s14, %s657_s0  ;;  %p663_p10 = scmp.lt.s32.totalorder %s657_s0, %s657_s0 }
 0x2b4   :  { %p664_p11 = por %p663_p10, %p662_p9 }
 0x2b6   :  { %p665_p12 = pnand %p664_p11, %p658_p8 }
 0x2b8   :  { %668 = shalt.err (!%p665_p12)
}
 0x2b9   :  { %s669_s24 = scalar_lea.hbm %s902_s9, 512 }
 0x2ba   :  { %p670_p13 = scmp.ne.s32.totalorder %s902_s9, %s669_s24  ;;  %p673_p0 = scmp.lt.u32.totalorder %s669_s24, %s902_s9 }
 0x2bc   :  { %p675_p1 = pnand %p673_p0, %p670_p13 }
 0x2be   :  { %678 = shalt.err (!%p675_p1)
}
 0x2bf   :  { %495 = dma.vmem_to_hbm [thread:$0]  %s850_s14, 512, %s902_s9, [#allocation3], %s712_s1, %s712_s1, %s713_s21   ;;  %v406_v1 = vpop.permute.xlu0 %405 }
 0x2c0   :  { %s714_s28 = smov [#allocation6]  }
 0x2c1   :  { %s514_s5 = sshll.u32 %s714_s28, 4  ;;  %s515_s5 = int_to_ptr.vmem [resolvable:$true] %s514_s5 }
 0x2c2   :  { %s679_s29 = scalar_lea.vmem %s515_s5, 64  ;;  %p684_p3 = scmp.lt.s32.totalorder %s515_s5, %s515_s5 }
 0x2c3   :  { %p680_p2 = scmp.ne.s32.totalorder %s515_s5, %s679_s29  ;;  %p685_p4 = scmp.lt.s32.totalorder %s679_s29, %s679_s29 }
 0x2c5   :  { %p686_p5 = por %p685_p4, %p684_p3 }
 0x2c7   :  { %p687_p6 = pnand %p686_p5, %p680_p2 }
 0x37a   :  { %v477_v4 = vpop.f32.mrb[2].mxu0 }
 0x37b   :  { %v478_v5 = vadd.f32 %v477_v4, %v406_v1  ;;  %v605_v6 = vpop.f32.mrb[3].mxu0 }
 0x37d   :  { %v481_v7 = vmul.f32 0.01, %v478_v5 }
 0x37f   :  { %v482_v8 = vmax.f32 %v478_v5, %v481_v7 }
 0x381   :  { %483 = vst [vmem:[#allocation6] sm:$0xf] %v482_v8 }
 0x382   :  { %690 = shalt.err (!%p687_p6)
}
 0x383   :  { %s691_s9 = scalar_lea.hbm %s904_s11, 64 }
 0x384   :  { %p692_p7 = scmp.ne.s32.totalorder %s904_s11, %s691_s9  ;;  %p695_p8 = scmp.lt.u32.totalorder %s691_s9, %s904_s11 }
 0x386   :  { %p697_p9 = pnand %p695_p8, %p692_p7 }
 0x388   :  { %700 = shalt.err (!%p697_p9)
}
 0x389   :  { %517 = dma.vmem_to_hbm [thread:$0]  %s515_s5, 64, %s904_s11, [#allocation5]  }
 0x38a   :  { %701 = dma.done.wait [#allocation3], 512  }
 0x38b   :  { %702 = vsyncadd [#allocation3], 4294966784 }
 0x38c   :  { %703 = dma.done.wait [#allocation5], 576  }
 0x38d   :  { %704 = vsyncadd [#allocation5], 4294966720 }
 0x38e   :  { %527 = vsyncpa [#allocation3], 1 }
 0x38f   :  { %528 = vsyncpa [#allocation5], 1 }

// kernel: tpu_custom_call.1
= control target key start
LH: loop header
LB: loop body
LE: loop exit
PB: predicated region body
PF: predicated region fallthrough
CT: control target
= control target key end

     0   :  { %17 = vsyncpa [#allocation3], 0  ;;  %v38_v0 = vlaneseq  ;;  %v705_v1 = vmov 0.0|0.0   ;;  %s893_s0 = inlined_call_operand.vmem [shape: f32[4,128], index: 0, kind: input, shape index: {}]   ;;  %s894_s1 = inlined_call_operand.vmem [shape: s32[1,128], index: 1, kind: input, shape index: {}]   ;;  %s895_s2 = inlined_call_operand.vmem [shape: f32[4,16], index: 2, kind: input, shape index: {}]   ;;  %s896_s3 = inlined_call_operand.vmem [shape: f32[32,4], index: 3, kind: input, shape index: {}]   ;;  %s897_s4 = inlined_call_operand.vmem [shape: f32[32,1], index: 4, kind: input, shape index: {}]   ;;  %s898_s5 = inlined_call_operand.vmem [shape: f32[32,32], index: 5, kind: input, shape index: {}]   ;;  %s899_s6 = inlined_call_operand.vmem [shape: f32[32,1], index: 6, kind: input, shape index: {}]   ;;  %s900_s7 = inlined_call_operand.vmem [shape: f32[4,32], index: 7, kind: input, shape index: {}]   ;;  %s901_s8 = inlined_call_operand.vmem [shape: f32[4,1], index: 8, kind: input, shape index: {}]   ;;  %s902_s9 = inlined_call_operand.hbm [shape: f32[32,128], index: 9, kind: output, shape index: {0}]   ;;  %s903_s10 = inlined_call_operand.hbm [shape: f32[32,128], index: 10, kind: output, shape index: {1}]   ;;  %s904_s11 = inlined_call_operand.hbm [shape: f32[4,128], index: 11, kind: output, shape index: {2}]  }
   0x1   :  { %606 = vmatprep.subr.bf16.mxu0 %v705_v1  ;;  %v529_v2 = vld [vmem:[%s894_s1] ss:$0 sm:$0xff] }
   0x2   :  { %18 = vsyncpa [#allocation5], 0  ;;  %v39_v3 = vshrl.u32 %v38_v0, 7  ;;  %vm706_vm0 = vmmov 0   ;;  %v707_v4 = vmov 0.0   ;;  %vm53_vm4 = vcmask 130048  }
   0x3   :  { %570 = vmatprep.mubr.msk.f32.mxu0 %vm706_vm0, %v707_v4  ;;  %v708_v6 = vmov 1.0|1.0   ;;  %v52_v7 = vld [vmem:[%s895_s2] sm:$0xf]  ;;  %vm157_vm5 = vcmask 31744   ;;  %v135_v10 = vld [vmem:[%s897_s4 + $0x10] sm:$0xff] }
   0x4   :  { %v40_v5 = vadd.s32 8, %v39_v3  ;;  %vm46_vm1 = vcmp.eq.s32.totalorder %v39_v3, %v529_v2  ;;  %v129_v8 = vld [vmem:[%s896_s3] sm:$0xff]  ;;  %v709_v11 = vmov 0   ;;  %v134_v12 = vld [vmem:[%s897_s4 + $0x8] sm:$0xff]  ;;  %v136_v13 = vld [vmem:[%s897_s4 + $0x18] sm:$0xff]  ;;  %vm170_vm7 = vcmask 1043456  }
   0x5   :  { %575 = vmatprep.mubr.msk.f32.mxu1 %vm157_vm5, %v129_v8  ;;  %v133_v9 = vld [vmem:[%s897_s4] sm:$0xff]  ;;  %633 = vset.pattern.permute.xlu0 %v709_v11  ;;  %v268_v15 = vld [vmem:[%s899_s6 + $0x8] sm:$0xff]  ;;  %v269_v16 = vld [vmem:[%s899_s6 + $0x10] sm:$0xff]  ;;  %vm291_vm8 = vcmask 261120   ;;  %s710_s30 = smov [#allocation4]   ;;  %s711_s13 = smov [#allocation2]  }
   0x6   :  { %vm47_vm2 = vcmp.eq.s32.totalorder %v40_v5, %v529_v2  ;;  %634 = vset.pattern.permute.xlu1 %v709_v11  ;;  %139 = vperm.xlu0 %633, %v133_v9   ;;  %v267_v14 = vld [vmem:[%s899_s6] sm:$0xff]  ;;  %v270_v17 = vld [vmem:[%s899_s6 + $0x18] sm:$0xff]  ;;  %v130_v23 = vld [vmem:[%s896_s3 + $0x8] sm:$0xff]  ;;  %s501_s12 = sshll.u32 %s710_s30, 4  ;;  %s489_s14 = sshll.u32 %s711_s13, 4  ;;  %s502_s12 = int_to_ptr.vmem [resolvable:$true] %s501_s12  ;;  %s850_s14 = int_to_ptr.vmem [resolvable:$true] %s489_s14 }
   0x7   :  { %vm607_vm3 = vmpackc.low %vm47_vm2, %vm46_vm1  ;;  %149 = vperm.xlu1 %634, %v135_v10   ;;  %v402_v18 = vld [vmem:[%s901_s8] sm:$0xf]  ;;  %v131_v24 = vld [vmem:[%s896_s3 + $0x10] sm:$0xff]  ;;  %s635_s15 = scalar_lea.vmem %s502_s12, 512  ;;  %p640_p1 = scmp.lt.s32.totalorder %s502_s12, %s502_s12 }
   0x8   :  { %608 = vmatpush3.bf16.msk.msra.mxu0 %vm607_vm3, %v708_v6  ;;  %v37_v19 = vld [vmem:[%s893_s0] sm:$0xf]  ;;  %v132_v25 = vld [vmem:[%s896_s3 + $0x18] sm:$0xff]  ;;  %v264_v41 = vld [vmem:[%s898_s5 + $0x8] sm:$0xff]  ;;  %p636_p0 = scmp.ne.s32.totalorder %s502_s12, %s635_s15  ;;  %p641_p2 = scmp.lt.s32.totalorder %s635_s15, %s635_s15 }
   0x9   :  { %617 = vmatprep.subr.bf16.mxu0 %v705_v1  ;;  %vm127_vm6 = vcmp.ne.f32.partialorder %v37_v19, %v37_v19  ;;  %v263_v26 = vld [vmem:[%s898_s5] sm:$0xff]  ;;  %v265_v42 = vld [vmem:[%s898_s5 + $0x10] sm:$0xff]  ;;  %v266_v43 = vld [vmem:[%s898_s5 + $0x18] sm:$0xff] }
   0xa   :  { %144 = vperm.xlu0 %633, %v134_v12   ;;  %v401_v3 = vld [vmem:[%s900_s7] sm:$0xf]  ;;  %p642_p3 = por %p641_p2, %p640_p1 }
   0xb   :  { %571 = vmatmul.mubr.msk.f32.vlgmr.msra.gmra.mrb[0].mxu0 %vm53_vm4, %v52_v7  ;;  %154 = vperm.xlu1 %634, %v136_v13  }
   0xc   :  { %603 = vmatprep.mubr.msk.f32.mxu0 %vm706_vm0, %v707_v4  ;;  %p643_p4 = pnand %p642_p3, %p636_p0 }
   0xe   :  { %273 = vperm.xlu0 %633, %v267_v14  }
   0xf   :  { %278 = vperm.xlu1 %634, %v268_v15  }
  0x12   :  { %283 = vperm.xlu0 %633, %v269_v16  }
  0x13   :  { %288 = vperm.xlu1 %634, %v270_v17  }
  0x16   :  { %405 = vperm.xlu0 %633, %v402_v18  }
  0x85   :  { %v140_v27 = vpop.permute.xlu0 %139 }
  0x86   :  { %v150_v28 = vpop.permute.xlu1 %149 }
  0x89   :  { %v145_v29 = vpop.permute.xlu0 %144 }
  0x8a   :  { %v155_v34 = vpop.permute.xlu1 %154 }
  0x8d   :  { %v274_v45 = vpop.permute.xlu0 %273 }
  0x8e   :  { %v279_v44 = vpop.permute.xlu1 %278 }
  0x91   :  { %v284_v54 = vpop.permute.xlu0 %283 }
  0x92   :  { %v289_v51 = vpop.permute.xlu1 %288 }
  0xde   :  { %v123_v20 = vpop.f32.mrb[0].mxu0 }
  0xdf   :  { %v572_v21 = vpop.f32.mrb[1].mxu0  ;;  %v128_v22 = vsel %vm127_vm6, %v123_v20, %v37_v19 }
  0xe0   :  { %573 = vmatprep.subr.msk.mxu1 %vm170_vm7, %v128_v22 }
  0xe1   :  { %574 = vmatpush3.msk.msra.mxu1 %vm170_vm7, %v128_v22 }
  0xe2   :  { %576 = vmatmul.mubr.msk.f32.vlgmr.msra.gmra.mrb[0].mxu1 %vm157_vm5, %v130_v23 }
  0xe3   :  { %578 = vmatprep.mubr.msk.f32.mxu1 %vm157_vm5, %v131_v24 }
  0xe6   :  { %579 = vmatmul.mubr.msk.f32.gmra.mrb[2].mxu1 %vm157_vm5, %v132_v25 }
  0xe7   :  { %589 = vmatprep.mubr.msk.f32.mxu1 %vm291_vm8, %v263_v26 }
 0x1b5   :  { %v577_v30 = vpop.f32.mrb[0].mxu1 }
 0x1b6   :  { %v246_v31 = vadd.f32 %v577_v30, %v145_v29  ;;  %v240_v32 = vpop.f32.mrb[1].mxu1 }
 0x1b7   :  { %v241_v33 = vadd.f32 %v240_v32, %v140_v27 }
 0x1b8   :  { %260 = vst [vmem:[#allocation2 + $0x8] sm:$0xff] %v246_v31 }
 0x1b9   :  { %259 = vst [vmem:[#allocation2] sm:$0xff] %v241_v33  ;;  %v609_v35 = vpack.c.bf16 %v246_v31, %v241_v33  ;;  %v580_v36 = vpop.f32.mrb[2].mxu1 }
 0x1ba   :  { %v256_v37 = vadd.f32 %v580_v36, %v155_v34  ;;  %v250_v38 = vpop.f32.mrb[3].mxu1 }
 0x1bb   :  { %v251_v39 = vadd.f32 %v250_v38, %v150_v28  ;;  %610 = vmatprep.subr.bf16.mxu1 %v609_v35 }
 0x1bc   :  { %262 = vst [vmem:[#allocation2 + $0x18] sm:$0xff] %v256_v37  ;;  %612 = vmatpush3.bf16.msra.mxu1 %v609_v35 }
 0x1bd   :  { %261 = vst [vmem:[#allocation2 + $0x10] sm:$0xff] %v251_v39  ;;  %v613_v40 = vpack.c.bf16 %v256_v37, %v251_v39 }
 0x1bf   :  { %614 = vmatprep.subr.bf16.mxu1 %v613_v40 }
 0x1c0   :  { %616 = vmatpush3.bf16.msra.mxu1 %v613_v40 }
 0x1c3   :  { %590 = vmatmul.mubr.msk.f32.vlgmr.msra.gmra.mrb[4].mxu1 %vm291_vm8, %v264_v41 }
 0x1c4   :  { %592 = vmatprep.mubr.msk.f32.mxu1 %vm291_vm8, %v265_v42 }
 0x1c7   :  { %593 = vmatmul.mubr.msk.f32.gmra.mrb[6].mxu1 %vm291_vm8, %v266_v43 }
 0x296   :  { %v591_v46 = vpop.f32.mrb[4].mxu1 }
 0x297   :  { %v376_v47 = vadd.f32 %v591_v46, %v279_v44  ;;  %v370_v48 = vpop.f32.mrb[5].mxu1 }
 0x298   :  { %v371_v49 = vadd.f32 %v370_v48, %v274_v45 }
 0x299   :  { %v390_v50 = vmul.f32 0.01, %v376_v47 }
 0x29a   :  { %v389_v52 = vmul.f32 0.01, %v371_v49  ;;  %v594_v53 = vpop.f32.mrb[6].mxu1 }
 0x29b   :  { %v394_v55 = vmax.f32 %v376_v47, %v390_v50  ;;  %v386_v56 = vadd.f32 %v594_v53, %v289_v51  ;;  %v380_v57 = vpop.f32.mrb[7].mxu1 }
 0x29c   :  { %v393_v58 = vmax.f32 %v371_v49, %v389_v52  ;;  %v381_v59 = vadd.f32 %v380_v57, %v284_v54 }
 0x29d   :  { %398 = vst [vmem:[#allocation4 + $0x8] sm:$0xff] %v394_v55  ;;  %v392_v60 = vmul.f32 0.01, %v386_v56 }
 0x29e   :  { %397 = vst [vmem:[#allocation4] sm:$0xff] %v393_v58  ;;  %v618_v61 = vpack.c.bf16 %v394_v55, %v393_v58  ;;  %v391_v62 = vmul.f32 0.01, %v381_v59 }
 0x29f   :  { %v396_v63 = vmax.f32 %v386_v56, %v392_v60 }
 0x2a0   :  { %v395_v0 = vmax.f32 %v381_v59, %v391_v62  ;;  %619 = vmatpush3.bf16.msra.mxu0 %v618_v61 }
 0x2a1   :  { %400 = vst [vmem:[#allocation4 + $0x18] sm:$0xff] %v396_v63  ;;  %620 = vmatprep.subr.bf16.mxu0 %v705_v1 }
 0x2a2   :  { %399 = vst [vmem:[#allocation4 + $0x10] sm:$0xff] %v395_v0  ;;  %v621_v2 = vpack.c.bf16 %v396_v63, %v395_v0 }
 0x2a4   :  { %622 = vmatpush3.bf16.msra.mxu0 %v621_v2 }
 0x2a7   :  { %604 = vmatmul.mubr.msk.f32.vlgmr.msra.gmra.mrb[2].mxu0 %vm291_vm8, %v401_v3 }
 0x2a8   :  { %646 = shalt.err (!%p643_p4)
}
 0x2a9   :  { %s647_s7 = scalar_lea.hbm %s903_s10, 512 }
 0x2aa   :  { %p648_p5 = scmp.ne.s32.totalorder %s903_s10, %s647_s7  ;;  %p651_p6 = scmp.lt.u32.totalorder %s647_s7, %s903_s10 }
 0x2ac   :  { %p653_p7 = pnand %p651_p6, %p648_p5 }
 0x2ae   :  { %656 = shalt.err (!%p653_p7)
}
 0x2af   :  { %s712_s1 = smov 128   ;;  %s713_s21 = smov 8  }
 0x2b0   :  { %507 = dma.vmem_to_hbm [thread:$0]  %s502_s12, 512, %s903_s10, [#allocation5], %s712_s1, %s712_s1, %s713_s21  }
 0x2b1   :  { %s657_s0 = scalar_lea.vmem %s850_s14, 512  ;;  %p662_p9 = scmp.lt.s32.totalorder %s850_s14, %s850_s14 }
 0x2b2   :  { %p658_p8 = scmp.ne.s32.totalorder %s850_s14, %s657_s0  ;;  %p663_p10 = scmp.lt.s32.totalorder %s657_s0, %s657_s0 }
 0x2b4   :  { %p664_p11 = por %p663_p10, %p662_p9 }
 0x2b6   :  { %p665_p12 = pnand %p664_p11, %p658_p8 }
 0x2b8   :  { %668 = shalt.err (!%p665_p12)
}
 0x2b9   :  { %s669_s24 = scalar_lea.hbm %s902_s9, 512 }
 0x2ba   :  { %p670_p13 = scmp.ne.s32.totalorder %s902_s9, %s669_s24  ;;  %p673_p0 = scmp.lt.u32.totalorder %s669_s24, %s902_s9 }
 0x2bc   :  { %p675_p1 = pnand %p673_p0, %p670_p13 }
 0x2be   :  { %678 = shalt.err (!%p675_p1)
}
 0x2bf   :  { %495 = dma.vmem_to_hbm [thread:$0]  %s850_s14, 512, %s902_s9, [#allocation3], %s712_s1, %s712_s1, %s713_s21   ;;  %v406_v1 = vpop.permute.xlu0 %405 }
 0x2c0   :  { %s714_s28 = smov [#allocation6]  }
 0x2c1   :  { %s514_s5 = sshll.u32 %s714_s28, 4  ;;  %s515_s5 = int_to_ptr.vmem [resolvable:$true] %s514_s5 }
 0x2c2   :  { %s679_s29 = scalar_lea.vmem %s515_s5, 64  ;;  %p684_p3 = scmp.lt.s32.totalorder %s515_s5, %s515_s5 }
 0x2c3   :  { %p680_p2 = scmp.ne.s32.totalorder %s515_s5, %s679_s29  ;;  %p685_p4 = scmp.lt.s32.totalorder %s679_s29, %s679_s29 }
 0x2c5   :  { %p686_p5 = por %p685_p4, %p684_p3 }
 0x2c7   :  { %p687_p6 = pnand %p686_p5, %p680_p2 }
 0x37a   :  { %v477_v4 = vpop.f32.mrb[2].mxu0 }
 0x37b   :  { %v478_v5 = vadd.f32 %v477_v4, %v406_v1  ;;  %v605_v6 = vpop.f32.mrb[3].mxu0 }
 0x37d   :  { %v481_v7 = vmul.f32 0.01, %v478_v5 }
 0x37f   :  { %v482_v8 = vmax.f32 %v478_v5, %v481_v7 }
 0x381   :  { %483 = vst [vmem:[#allocation6] sm:$0xf] %v482_v8 }
 0x382   :  { %690 = shalt.err (!%p687_p6)
}
 0x383   :  { %s691_s9 = scalar_lea.hbm %s904_s11, 64 }
 0x384   :  { %p692_p7 = scmp.ne.s32.totalorder %s904_s11, %s691_s9  ;;  %p695_p8 = scmp.lt.u32.totalorder %s691_s9, %s904_s11 }
 0x386   :  { %p697_p9 = pnand %p695_p8, %p692_p7 }
 0x388   :  { %700 = shalt.err (!%p697_p9)
}
 0x389   :  { %517 = dma.vmem_to_hbm [thread:$0]  %s515_s5, 64, %s904_s11, [#allocation5]  }
 0x38a   :  { %701 = dma.done.wait [#allocation3], 512  }
 0x38b   :  { %702 = vsyncadd [#allocation3], 4294966784 }
 0x38c   :  { %703 = dma.done.wait [#allocation5], 576  }
 0x38d   :  { %704 = vsyncadd [#allocation5], 4294966720 }
 0x38e   :  { %527 = vsyncpa [#allocation3], 1 }
 0x38f   :  { %528 = vsyncpa [#allocation5], 1 }

</bundles_post_ra>
